<compile_context>
chip_gen: v7x
topology: tpu7x:2x2x1
jax: 0.10.0
libtpu: 0.0.40
codegen_flags: <defaults>
</compile_context>

<pallas_src>
import jax
import jax.numpy as jnp
from jax.experimental import pallas as pl
from jax.experimental.pallas import tpu as pltpu


def _round_up(x: int, m: int) -> int:
    return ((x + m - 1) // m) * m


def motion_encoder_kernel(x_ref, w1_ref, b1_ref, w2_ref, b2_ref, o_ref):
    # fc1: (TM, D_in) @ (D_in, H) + (1, H)
    h = jnp.dot(x_ref[...], w1_ref[...], preferred_element_type=jnp.float32)
    # bias + ReLU on the VPU, in f32.
    h = jnp.maximum(h + b1_ref[...], 0.0)
    # fc2: (TM, H) @ (H, D_out) + (1, D_out)
    y = jnp.dot(h.astype(w2_ref.dtype), w2_ref[...],
                preferred_element_type=jnp.float32)
    o_ref[...] = (y + b2_ref[...]).astype(o_ref.dtype)


def motion_encoder(x, w1, b1, w2, b2, *, block_rows=512):
    """Fused Linear -> ReLU -> Linear.

    x:  (N, D_in)  — N is the flattened B*T row batch.
    w1: (D_in, H), b1: (1, H), w2: (H, D_out), b2: (1, D_out).
    block_rows: row-tile size (multiple of 8); weights stay VMEM-resident
    across all row tiles.
    """
    assert block_rows % 8 == 0, "block_rows must be a multiple of 8 sublanes"
    N, D_in = x.shape
    H = w1.shape[1]
    D_out = w2.shape[1]

    # Row tile: multiple of 8 sublanes, capped at the (padded) batch size.
    tm = min(block_rows, _round_up(N, 8))
    n_pad = _round_up(N, tm)
    if n_pad != N:
        x = jnp.pad(x, ((0, n_pad - N), (0, 0)))

    itemsize = jnp.dtype(x.dtype).itemsize
    cost = pl.CostEstimate(
        flops=2 * n_pad * (D_in * H + H * D_out),
        transcendentals=0,
        bytes_accessed=(n_pad * (D_in + D_out) + D_in * H + H + H * D_out + D_out)
        * itemsize,
    )

    out = pl.pallas_call(
        motion_encoder_kernel,
        out_shape=jax.ShapeDtypeStruct((n_pad, D_out), x.dtype),
        grid=(n_pad // tm,),
        in_specs=[
            # x streams one row-tile per grid step.
            pl.BlockSpec((tm, D_in), lambda i: (i, 0)),
            # Weights/biases: constant block index -> DMA'd once, VMEM-resident.
            pl.BlockSpec((D_in, H), lambda i: (0, 0)),
            pl.BlockSpec((1, H), lambda i: (0, 0)),
            pl.BlockSpec((H, D_out), lambda i: (0, 0)),
            pl.BlockSpec((1, D_out), lambda i: (0, 0)),
        ],
        out_specs=pl.BlockSpec((tm, D_out), lambda i: (i, 0)),
        compiler_params=pltpu.CompilerParams(
            dimension_semantics=("parallel",)),
        cost_estimate=cost,
    )(x, w1, b1, w2, b2)

    return out[:N]


def init_params(key, input_size, hidden_size, output_size):
    """Deterministic init mimicking nn.Linear default (U(+/- 1/sqrt(fan_in))).

    PyTorch stores Linear weights as (out, in); we return the transposed
    (in, out) layout so the kernel computes x @ W + b directly.
    """
    k1, k2, k3, k4 = jax.random.split(key, 4)
    lim1 = 1.0 / (input_size ** 0.5)
    lim2 = 1.0 / (hidden_size ** 0.5)
    w1 = jax.random.uniform(k1, (input_size, hidden_size), jnp.float32,
                            minval=-lim1, maxval=lim1)
    b1 = jax.random.uniform(k2, (1, hidden_size), jnp.float32,
                            minval=-lim1, maxval=lim1)
    w2 = jax.random.uniform(k3, (hidden_size, output_size), jnp.float32,
                            minval=-lim2, maxval=lim2)
    b2 = jax.random.uniform(k4, (1, output_size), jnp.float32,
                            minval=-lim2, maxval=lim2)
    return w1, b1, w2, b2


if __name__ == "__main__":
    key = jax.random.PRNGKey(0)
    k_x, k_p = jax.random.split(key)

    # Shapes implied by the model: MotionEncoder(3, 5, 3) applied to
    # m of shape (B, T, 3), flattened to (B*T, 3) — same as m.view(B*T, X).
    B, T = 2, 40
    input_size, hidden_size, output_size = 3, 5, 3

    m = jax.random.normal(k_x, (B, T, input_size), jnp.float32)
    w1, b1, w2, b2 = init_params(k_p, input_size, hidden_size, output_size)

    x = m.reshape(B * T, input_size)
    # block_rows=32 so the 80-row batch exercises tiling (pad to 96, grid=3).
    out = motion_encoder(x, w1, b1, w2, b2, block_rows=32)
    out = jax.block_until_ready(out)
    out3d = out.reshape(B, T, output_size)

    # Pure-JAX reference check of the fused kernel.
    ref = jnp.maximum(x @ w1 + b1, 0.0) @ w2 + b2
    assert out.shape == (B * T, output_size)
    assert out3d.shape == (B, T, output_size)
    assert jnp.allclose(out, ref, atol=1e-5, rtol=1e-5)

    print("KERNEL_OK")
</pallas_src>

<mosaic_0001>
module attributes {stable_mosaic.version = 11 : i64} {
  func.func @motion_encoder_kernel(%arg0: i32, %arg1: memref<32x3xf32, #tpu.memory_space<vmem>>, %arg2: memref<3x5xf32, #tpu.memory_space<vmem>>, %arg3: memref<1x5xf32, #tpu.memory_space<vmem>>, %arg4: memref<5x3xf32, #tpu.memory_space<vmem>>, %arg5: memref<1x3xf32, #tpu.memory_space<vmem>>, %arg6: memref<32x3xf32, #tpu.memory_space<vmem>>) attributes {dimension_semantics = [#tpu.dimension_semantics<parallel>], iteration_bounds = array<i64: 3>, scalar_prefetch = 0 : i64, scratch_operands = 0 : i64, tpu.core_type = #tpu.core_type<tc>, window_params = [{transform_indices = @transform_0, window_bounds = array<i64: 32, 3>}, {pipeline_mode = #tpu.pipeline_mode<synchronous>, transform_indices = @transform_1, window_bounds = array<i64: 3, 5>}, {pipeline_mode = #tpu.pipeline_mode<synchronous>, transform_indices = @transform_2, window_bounds = array<i64: 1, 5>}, {pipeline_mode = #tpu.pipeline_mode<synchronous>, transform_indices = @transform_3, window_bounds = array<i64: 5, 3>}, {pipeline_mode = #tpu.pipeline_mode<synchronous>, transform_indices = @transform_4, window_bounds = array<i64: 1, 3>}, {transform_indices = @transform_5, window_bounds = array<i64: 32, 3>}]} {
    %c0 = arith.constant 0 : index
    %c0_0 = arith.constant 0 : index
    %0 = vector.load %arg1[%c0, %c0_0] : memref<32x3xf32, #tpu.memory_space<vmem>>, vector<32x3xf32>
    %c0_1 = arith.constant 0 : index
    %c0_2 = arith.constant 0 : index
    %1 = vector.load %arg2[%c0_1, %c0_2] : memref<3x5xf32, #tpu.memory_space<vmem>>, vector<3x5xf32>
    %cst = arith.constant dense<0.000000e+00> : vector<32x5xf32>
    %2 = tpu.matmul %0, %1, %cst {dimension_numbers = #tpu.dot_dimension_numbers<[1], [0], [0], [1], [0, 0, 1, 1], [], []>} : vector<32x3xf32>, vector<3x5xf32>, vector<32x5xf32> -> vector<32x5xf32>
    %c0_3 = arith.constant 0 : index
    %c0_4 = arith.constant 0 : index
    %3 = vector.load %arg3[%c0_3, %c0_4] : memref<1x5xf32, #tpu.memory_space<vmem>>, vector<1x5xf32>
    %4 = vector.broadcast %3 : vector<1x5xf32> to vector<32x5xf32>
    %5 = arith.addf %2, %4 : vector<32x5xf32>
    %cst_5 = arith.constant 0.000000e+00 : f32
    %6 = vector.broadcast %cst_5 : f32 to vector<32x5xf32>
    %7 = arith.maximumf %5, %6 : vector<32x5xf32>
    %c0_6 = arith.constant 0 : index
    %c0_7 = arith.constant 0 : index
    %8 = vector.load %arg4[%c0_6, %c0_7] : memref<5x3xf32, #tpu.memory_space<vmem>>, vector<5x3xf32>
    %cst_8 = arith.constant dense<0.000000e+00> : vector<32x3xf32>
    %9 = tpu.matmul %7, %8, %cst_8 {dimension_numbers = #tpu.dot_dimension_numbers<[1], [0], [0], [1], [0, 0, 1, 1], [], []>} : vector<32x5xf32>, vector<5x3xf32>, vector<32x3xf32> -> vector<32x3xf32>
    %c0_9 = arith.constant 0 : index
    %c0_10 = arith.constant 0 : index
    %10 = vector.load %arg5[%c0_9, %c0_10] : memref<1x3xf32, #tpu.memory_space<vmem>>, vector<1x3xf32>
    %11 = vector.broadcast %10 : vector<1x3xf32> to vector<32x3xf32>
    %12 = arith.addf %9, %11 : vector<32x3xf32>
    %c0_11 = arith.constant 0 : index
    %c0_12 = arith.constant 0 : index
    %13 = vector.load %arg6[%c0_11, %c0_12] : memref<32x3xf32, #tpu.memory_space<vmem>>, vector<32x3xf32>
    tpu.vector_store %arg6[%c0_11, %c0_12], %12 {strides = array<i32>} : memref<32x3xf32, #tpu.memory_space<vmem>>, vector<32x3xf32>,
    return
  }
  func.func @transform_0(%arg0: i32) -> (i32, i32) {
    %c0_i32 = arith.constant 0 : i32
    %c0_i32_0 = arith.constant 0 : i32
    return %arg0, %c0_i32 : i32, i32
  }
  func.func @transform_1(%arg0: i32) -> (i32, i32) {
    %c0_i32 = arith.constant 0 : i32
    %c0_i32_0 = arith.constant 0 : i32
    %c0_i32_1 = arith.constant 0 : i32
    return %c0_i32, %c0_i32_0 : i32, i32
  }
  func.func @transform_2(%arg0: i32) -> (i32, i32) {
    %c0_i32 = arith.constant 0 : i32
    %c0_i32_0 = arith.constant 0 : i32
    %c0_i32_1 = arith.constant 0 : i32
    return %c0_i32, %c0_i32_0 : i32, i32
  }
  func.func @transform_3(%arg0: i32) -> (i32, i32) {
    %c0_i32 = arith.constant 0 : i32
    %c0_i32_0 = arith.constant 0 : i32
    %c0_i32_1 = arith.constant 0 : i32
    return %c0_i32, %c0_i32_0 : i32, i32
  }
  func.func @transform_4(%arg0: i32) -> (i32, i32) {
    %c0_i32 = arith.constant 0 : i32
    %c0_i32_0 = arith.constant 0 : i32
    %c0_i32_1 = arith.constant 0 : i32
    return %c0_i32, %c0_i32_0 : i32, i32
  }
  func.func @transform_5(%arg0: i32) -> (i32, i32) {
    %c0_i32 = arith.constant 0 : i32
    %c0_i32_0 = arith.constant 0 : i32
    return %arg0, %c0_i32 : i32, i32
  }
}

</mosaic_0001>

<bundles_post_ra>
// kernel: tpu_custom_call.1
= control target key start
LH: loop header
LB: loop body
LE: loop exit
PB: predicated region body
PF: predicated region fallthrough
CT: control target
= control target key end

     0   :  { %s611_s18 = smov 0   ;;  %s655_s0 = inlined_call_operand.vmem [shape: f32[96,3], index: 0, kind: input, shape index: {}]   ;;  %s656_s1 = inlined_call_operand.vmem [shape: f32[3,5], index: 1, kind: input, shape index: {}]   ;;  %s657_s2 = inlined_call_operand.vmem [shape: f32[1,5], index: 2, kind: input, shape index: {}]   ;;  %s658_s3 = inlined_call_operand.vmem [shape: f32[5,3], index: 3, kind: input, shape index: {}]   ;;  %s659_s4 = inlined_call_operand.vmem [shape: f32[1,3], index: 4, kind: input, shape index: {}]   ;;  %s660_s5 = inlined_call_operand.vmem [shape: f32[96,3], index: 5, kind: output, shape index: {}]  }
   0x1 LB: > { %s516_s19 = sadd.s32 4294967295, %s579_s18   ;;  %p520_p0 = scmp.ge.s32.totalorder %s579_s18, 1  ;;  %s579_s18 = sphi %s611_s18, %s15_s18  }
   0x2   : > { %p188_p1 = scmp.lt.s32.totalorder %s579_s18, 4 }
   0x4   : > { %p189_p2 = pnand %p520_p0, %p188_p1 }
   0x5   : > { %v232_v0 = vld [vmem:[%s656_s1] sm:$0x7] (!%p189_p2)  ;;  %vm253_vm0 = vcmask (!%p189_p2), 1042432   ;;  %s521_s22 = sshll.u32 (!%p189_p2), %s516_s19, 2  ;;  %vm240_vm1 = vcmask (!%p189_p2), 23552   ;;  %vm367_vm2 = vcmask (!%p189_p2), 1044480  }
   0x6   : > { %192 = sbr.rel (%p189_p2) target bundleno = 456 (0x1c8), region = 40  ;;  %549 = vmatprep.subr.msk.mxu0 (!%p189_p2), %vm253_vm0, %v232_v0  ;;  %p217_p3 = scmp.lt.s32.totalorder (!%p189_p2), %s521_s22, 11  ;;  %v346_v5 = vld [vmem:[%s658_s3] sm:$0x1f] (!%p189_p2)  ;;  %vm354_vm3 = vcmask (!%p189_p2), 39936  }
   0x7   : > { %550 = vmatpush3.msk.msra.mxu0 (!%p189_p2), %vm253_vm0, %v232_v0  ;;  %557 = vmatprep.subr.msk.mxu1 (!%p189_p2), %vm367_vm2, %v346_v5  ;;  %v525_v6 = vld [vmem:[%s657_s2] ss:$0 sm:$0xff] (!%p189_p2) }
   0x8   : > { %558 = vmatpush3.msk.msra.mxu1 (!%p189_p2), %vm367_vm2, %v346_v5  ;;  %v531_v19 = vld [vmem:[%s659_s4] ss:$0 sm:$0xff] (!%p189_p2) }
   0xd   : > { %s662_s22 = smov (!%p217_p3, %s521_s22), 11 }
   0xe   : > { %s522_s23 = sshll.u32 %s662_s22, 3 }
   0xf   : > { %s220_s26 = scalar_lea.vmem %s655_s0, %s522_s23  ;;  %s226_s10 = scalar_lea.vmem %s660_s5, %s522_s23 }
  0x10   : > { %v228_v1 = vld [vmem:[%s220_s26] sm:$0xff]  ;;  %v229_v2 = vld [vmem:[%s220_s26 + $0x8] sm:$0xff]  ;;  %v230_v3 = vld [vmem:[%s220_s26 + $0x10] sm:$0xff] }
  0x11   : > { %551 = vmatprep.mubr.msk.f32.mxu0 %vm240_vm1, %v228_v1  ;;  %v231_v4 = vld [vmem:[%s220_s26 + $0x18] sm:$0xff] }
  0x12   : > { %552 = vmatmul.mubr.msk.f32.vlgmr.msra.gmra.mrb[0].mxu0 %vm240_vm1, %v229_v2 }
  0x13   : > { %554 = vmatprep.mubr.msk.f32.mxu0 %vm240_vm1, %v230_v3 }
  0x16   : > { %555 = vmatmul.mubr.msk.f32.gmra.mrb[2].mxu0 %vm240_vm1, %v231_v4 }
  0xe5   : > { %v553_v7 = vpop.f32.mrb[0].mxu0 }
  0xe6   : > { %v329_v8 = vadd.f32 %v553_v7, %v525_v6  ;;  %v323_v9 = vpop.f32.mrb[1].mxu0 }
  0xe7   : > { %v324_v10 = vadd.f32 %v525_v6, %v323_v9 }
  0xe8   : > { %v343_v13 = vmax.f32 %v329_v8, 0.0 }
  0xe9   : > { %v342_v11 = vmax.f32 %v324_v10, 0.0  ;;  %v556_v12 = vpop.f32.mrb[2].mxu0 }
  0xea   : > { %v339_v14 = vadd.f32 %v556_v12, %v525_v6  ;;  %v333_v15 = vpop.f32.mrb[3].mxu0 }
  0xeb   : > { %v334_v16 = vadd.f32 %v525_v6, %v333_v15  ;;  %559 = vmatprep.mubr.msk.f32.mxu1 %vm354_vm3, %v342_v11 }
  0xec   : > { %560 = vmatmul.mubr.msk.f32.vlgmr.msra.gmra.mrb[0].mxu1 %vm354_vm3, %v343_v13  ;;  %v345_v18 = vmax.f32 %v339_v14, 0.0 }
  0xed   : > { %v344_v17 = vmax.f32 %v334_v16, 0.0 }
  0xef   : > { %562 = vmatprep.mubr.msk.f32.mxu1 %vm354_vm3, %v344_v17 }
  0xf0   : > { %563 = vmatmul.mubr.msk.f32.gmra.mrb[2].mxu1 %vm354_vm3, %v345_v18 }
 0x1bf   : > { %v561_v20 = vpop.f32.mrb[0].mxu1 }
 0x1c0   : > { %v443_v21 = vadd.f32 %v561_v20, %v531_v19  ;;  %v437_v22 = vpop.f32.mrb[1].mxu1 }
 0x1c1   : > { %v438_v23 = vadd.f32 %v531_v19, %v437_v22 }
 0x1c2   : > { %457 = vst.msk [vmem:[%s226_s10 + $0x8] sm:$0xff] %vm240_vm1, %v443_v21 }
 0x1c3   : > { %456 = vst.msk [vmem:[%s226_s10] sm:$0xff] %vm240_vm1, %v438_v23  ;;  %v564_v24 = vpop.f32.mrb[2].mxu1 }
 0x1c4   : > { %v453_v25 = vadd.f32 %v564_v24, %v531_v19  ;;  %v447_v26 = vpop.f32.mrb[3].mxu1 }
 0x1c5   : > { %v448_v27 = vadd.f32 %v531_v19, %v447_v26 }
 0x1c6   : > { %459 = vst.msk [vmem:[%s226_s10 + $0x18] sm:$0xff] %vm240_vm1, %v453_v25 }
 0x1c7   : > { %458 = vst.msk [vmem:[%s226_s10 + $0x10] sm:$0xff] %vm240_vm1, %v448_v27 }
 0x1c8 PF: > { %s15_s18 = sadd.s32 1, %s579_s18  }
 0x1c9   : > { %p12_p4 = scmp.ge.s32.totalorder %s15_s18, 5  }
 0x1cb   :  { %14 = sbr.rel (!%p12_p4) target bundleno = 1 (0x1), region = 70 }

</bundles_post_ra>
